<compile_context>
chip_gen: v6e
topology: v6e:2x2x1
jax: 0.10.0
libtpu: 0.0.40
codegen_flags: <defaults>
</compile_context>

<pallas_src>
import math
import jax
import jax.numpy as jnp
from jax.experimental import pallas as pl
from jax.experimental.pallas import tpu as pltpu

LANE = 128
SUBLANE = 8


def _round_up(x, m):
    return (x + m - 1) // m * m


def _pad2d(a, rows, cols):
    r, c = a.shape
    if r == rows and c == cols:
        return a
    return jnp.pad(a, ((0, rows - r), (0, cols - c)))


def _pad_hidden(d):
    # 256-align larger hidden dims (v6e/v7x MXUs are 256x256); 128 otherwise.
    return _round_up(d, 2 * LANE) if d > LANE else LANE


def mlp_kernel(x_ref, w1_ref, b1_ref, w2_ref, b2_ref, w3_ref, b3_ref, o_ref):
    # TODO(synk): for very large N1/N2, replace the SSA f32 h1/h2 intermediates
    # with explicit VMEM scratch + an unrolled fori_loop over 256-lane panels
    # to bound vreg pressure.
    h1 = jnp.dot(x_ref[...], w1_ref[...], preferred_element_type=jnp.float32)
    h1 = jnp.maximum(h1 + b1_ref[...], 0.0)

    h2 = jnp.dot(h1.astype(w2_ref.dtype), w2_ref[...],
                 preferred_element_type=jnp.float32)
    h2 = jnp.maximum(h2 + b2_ref[...], 0.0)

    y = jnp.dot(h2.astype(w3_ref.dtype), w3_ref[...],
                preferred_element_type=jnp.float32) + b3_ref[...]
    o_ref[...] = y.astype(o_ref.dtype)


def prepare_params(params, *, use_bf16=True):
    """Pad + cast weights/biases ONCE (lane-dense feature dims, MXU dtype) so
    mlp_forward does no per-call weight traffic.

    params: w1 (in,N1), b1 (1,N1), w2 (N1,N2), b2 (1,N2), w3 (N2,out), b3 (1,out)
    (weights stored transposed to (in,out) so the kernel computes x @ W + b,
    same math as torch.nn.Linear).
    """
    w1, b1 = params["w1"], params["b1"]
    w2, b2 = params["w2"], params["b2"]
    w3, b3 = params["w3"], params["b3"]

    in_dim, N1 = w1.shape
    N2 = w2.shape[1]
    out_dim = w3.shape[1]

    # Layer-1 contraction dim stays unpadded (a block equal to the full array
    # dim is legal); hidden / output feature dims are lane-padded so MXU panels
    # and output stores are dense.  Zero padding keeps the math exact.
    n1_p = _pad_hidden(N1)
    n2_p = _pad_hidden(N2)
    out_p = _round_up(out_dim, LANE)

    mat_dtype = jnp.bfloat16 if use_bf16 else jnp.float32
    return {
        "w1": _pad2d(w1, in_dim, n1_p).astype(mat_dtype),
        "b1": _pad2d(b1, 1, n1_p).astype(jnp.float32),
        "w2": _pad2d(w2, n1_p, n2_p).astype(mat_dtype),
        "b2": _pad2d(b2, 1, n2_p).astype(jnp.float32),
        "w3": _pad2d(w3, n2_p, out_p).astype(mat_dtype),
        "b3": _pad2d(b3, 1, out_p).astype(jnp.float32),
        "dims": (in_dim, N1, N2, out_dim),
        "mat_dtype": mat_dtype,
    }


def mlp_forward(x, prepared, *, tile_m=512, vmem_limit_bytes=None):
    """Fused 3-layer MLP forward pass on pre-padded params (see prepare_params)."""
    in_dim, N1, N2, out_dim = prepared["dims"]
    mat_dtype = prepared["mat_dtype"]
    w1_p, b1_p = prepared["w1"], prepared["b1"]
    w2_p, b2_p = prepared["w2"], prepared["b2"]
    w3_p, b3_p = prepared["w3"], prepared["b3"]

    M, x_in = x.shape
    assert x_in == in_dim, "input feature dim mismatch"
    out_dtype = x.dtype

    n1_p, n2_p = w2_p.shape
    out_p = w3_p.shape[1]
    wbytes = jnp.dtype(mat_dtype).itemsize

    # ---- generation-aware VMEM cap (~75% of physical) ----
    try:
        phys_vmem = int(pltpu.get_tpu_info().vmem_capacity_bytes)
    except Exception:
        phys_vmem = 64 * 1024 * 1024          # assume the smallest (v7x) if unknown
    vmem_cap = phys_vmem * 3 // 4

    weight_bytes = (w1_p.size + w2_p.size + w3_p.size) * wbytes   # single-buffered
    bias_bytes = (b1_p.size + b2_p.size + b3_p.size) * 4

    def vmem_est(tm):
        return (weight_bytes + bias_bytes
                + 2 * tm * in_dim * wbytes        # x tile (double-buffered)
                + 2 * tm * out_p * 4              # out tile (double-buffered)
                + tm * (n1_p + n2_p) * 4)         # f32 h1/h2 intermediates

    # ---- MXU-sized batch tile; shrink for small batches / VMEM pressure ----
    tile_m = _round_up(max(SUBLANE, min(tile_m, _round_up(M, SUBLANE))), SUBLANE)
    while vmem_est(tile_m) > vmem_cap and tile_m > 8 * SUBLANE:
        tile_m = _round_up(tile_m // 2, SUBLANE)
    m_p = _round_up(M, tile_m)
    # Keep >=2 parallel grid steps when possible so v7x's 2nd TensorCore has work
    # (cost on 1-TC v5e/v6e is a single ~0.35us extra grid step).
    if m_p // tile_m < 2 and m_p >= 2 * SUBLANE:
        tile_m = _round_up(max(SUBLANE, tile_m // 2), SUBLANE)
        m_p = _round_up(M, tile_m)
    grid = (m_p // tile_m,)

    # TODO(synk): add a weight-streaming fallback (block w2/w3 along N with an
    # "arbitrary" grid axis + VMEM accumulator) when weight_bytes exceeds vmem_cap.

    if vmem_limit_bytes is None:
        need = vmem_est(tile_m) * 3 // 2 + (2 << 20)   # compiler-scratch headroom
        if need > 16 * 1024 * 1024:                    # default scoped limit may be too small
            vmem_limit_bytes = min(max(need, 32 * 1024 * 1024), vmem_cap)

    x_p = _pad2d(x, m_p, in_dim).astype(mat_dtype)

    flops = 2 * M * (in_dim * N1 + N1 * N2 + N2 * out_dim)
    bytes_accessed = (x_p.size * wbytes + weight_bytes + bias_bytes
                      + m_p * out_p * jnp.dtype(out_dtype).itemsize)

    resident = lambda shape: pl.BlockSpec(shape, lambda i: (0, 0),
                                          pipeline_mode=pl.Buffered(1))

    out_padded = pl.pallas_call(
        mlp_kernel,
        out_shape=jax.ShapeDtypeStruct((m_p, out_p), out_dtype),
        grid_spec=pltpu.PrefetchScalarGridSpec(
            num_scalar_prefetch=0,
            grid=grid,
            in_specs=[
                pl.BlockSpec((tile_m, in_dim), lambda i: (i, 0)),  # x tile (streamed)
                resident((in_dim, n1_p)),                          # w1 (resident)
                resident((1, n1_p)),                               # b1
                resident((n1_p, n2_p)),                            # w2
                resident((1, n2_p)),                               # b2
                resident((n2_p, out_p)),                           # w3
                resident((1, out_p)),                              # b3
            ],
            out_specs=pl.BlockSpec((tile_m, out_p), lambda i: (i, 0)),
        ),
        compiler_params=pltpu.CompilerParams(
            dimension_semantics=("parallel",),
            vmem_limit_bytes=vmem_limit_bytes),
        cost_estimate=pl.CostEstimate(flops=flops, transcendentals=0,
                                      bytes_accessed=bytes_accessed),
    )(x_p, w1_p, b1_p, w2_p, b2_p, w3_p, b3_p)

    return out_padded[:M, :out_dim]


def init_params(key, input_size, N1, N2, output_size, dtype=jnp.float32):
    """Deterministic init mimicking torch.nn.Linear defaults
    (uniform(-1/sqrt(fan_in), 1/sqrt(fan_in)) for weight and bias).
    Weights stored transposed as (in, out)."""
    keys = jax.random.split(key, 6)

    def linear(kw, kb, fan_in, fan_out):
        bound = 1.0 / math.sqrt(fan_in)
        w = jax.random.uniform(kw, (fan_in, fan_out), dtype, -bound, bound)
        b = jax.random.uniform(kb, (1, fan_out), dtype, -bound, bound)
        return w, b

    w1, b1 = linear(keys[0], keys[1], input_size, N1)
    w2, b2 = linear(keys[2], keys[3], N1, N2)
    w3, b3 = linear(keys[4], keys[5], N2, output_size)
    return {"w1": w1, "b1": b1, "w2": w2, "b2": b2, "w3": w3, "b3": b3}


def mlp_reference(x, p):
    h1 = jnp.maximum(x @ p["w1"] + p["b1"], 0.0)
    h2 = jnp.maximum(h1 @ p["w2"] + p["b2"], 0.0)
    return h2 @ p["w3"] + p["b3"]


def mlp_reference_bf16(x, p):
    """Emulates the kernel's bf16-input / f32-accumulate matmuls."""
    bf, f32 = jnp.bfloat16, jnp.float32

    def lin(a, w, b):
        return jnp.dot(a.astype(bf), w.astype(bf),
                       preferred_element_type=f32) + b

    h1 = jnp.maximum(lin(x, p["w1"], p["b1"]), 0.0)
    h2 = jnp.maximum(lin(h1, p["w2"], p["b2"]), 0.0)
    return lin(h2, p["w3"], p["b3"])


if __name__ == "__main__":
    # small shapes consistent with the module's forward
    batch, input_size, N1, N2, output_size = 16, 4, 32, 16, 3

    key = jax.random.PRNGKey(0)
    k_x, k_p, k_x2 = jax.random.split(key, 3)
    x = jax.random.normal(k_x, (batch, input_size), jnp.float32)
    params = init_params(k_p, input_size, N1, N2, output_size)

    # pad + cast weights once (outside the forward path)
    prepared = prepare_params(params, use_bf16=True)

    y = jax.block_until_ready(mlp_forward(x, prepared))
    assert y.shape == (batch, output_size)

    y_ref = mlp_reference(x, params)          # pure f32 reference
    y_ref_bf = mlp_reference_bf16(x, params)  # bf16-matmul reference
    assert jnp.allclose(y, y_ref_bf, atol=1e-2, rtol=1e-2), "mismatch vs bf16 reference"
    assert jnp.allclose(y, y_ref, atol=5e-2, rtol=5e-2), "mismatch vs f32 reference"

    # batch not divisible by the tile -> exercises the padding path
    x_odd = jax.random.normal(k_x2, (13, input_size), jnp.float32)
    y_odd = jax.block_until_ready(mlp_forward(x_odd, prepared))
    assert y_odd.shape == (13, output_size)
    assert jnp.allclose(y_odd, mlp_reference(x_odd, params), atol=5e-2, rtol=5e-2)

    print("KERNEL_OK")
</pallas_src>

<mosaic_0001>
module attributes {stable_mosaic.version = 11 : i64} {
  func.func @mlp_kernel(%arg0: i32, %arg1: memref<8x4xbf16, #tpu.memory_space<vmem>>, %arg2: memref<4x128xbf16, #tpu.memory_space<vmem>>, %arg3: memref<1x128xf32, #tpu.memory_space<vmem>>, %arg4: memref<128x128xbf16, #tpu.memory_space<vmem>>, %arg5: memref<1x128xf32, #tpu.memory_space<vmem>>, %arg6: memref<128x128xbf16, #tpu.memory_space<vmem>>, %arg7: memref<1x128xf32, #tpu.memory_space<vmem>>, %arg8: memref<8x128xf32, #tpu.memory_space<vmem>>) attributes {dimension_semantics = [#tpu.dimension_semantics<parallel>], iteration_bounds = array<i64: 2>, scalar_prefetch = 0 : i64, scratch_operands = 0 : i64, tpu.core_type = #tpu.core_type<tc>, window_params = [{transform_indices = @transform_0, window_bounds = array<i64: 8, 4>}, {pipeline_mode = #tpu.pipeline_mode<synchronous>, transform_indices = @transform_1, window_bounds = array<i64: 4, 128>}, {pipeline_mode = #tpu.pipeline_mode<synchronous>, transform_indices = @transform_2, window_bounds = array<i64: 1, 128>}, {pipeline_mode = #tpu.pipeline_mode<synchronous>, transform_indices = @transform_3, window_bounds = array<i64: 128, 128>}, {pipeline_mode = #tpu.pipeline_mode<synchronous>, transform_indices = @transform_4, window_bounds = array<i64: 1, 128>}, {pipeline_mode = #tpu.pipeline_mode<synchronous>, transform_indices = @transform_5, window_bounds = array<i64: 128, 128>}, {pipeline_mode = #tpu.pipeline_mode<synchronous>, transform_indices = @transform_6, window_bounds = array<i64: 1, 128>}, {transform_indices = @transform_7, window_bounds = array<i64: 8, 128>}]} {
    %c0 = arith.constant 0 : index
    %c0_0 = arith.constant 0 : index
    %0 = vector.load %arg1[%c0, %c0_0] : memref<8x4xbf16, #tpu.memory_space<vmem>>, vector<8x4xbf16>
    %c0_1 = arith.constant 0 : index
    %c0_2 = arith.constant 0 : index
    %1 = vector.load %arg2[%c0_1, %c0_2] : memref<4x128xbf16, #tpu.memory_space<vmem>>, vector<4x128xbf16>
    %cst = arith.constant dense<0.000000e+00> : vector<8x128xf32>
    %2 = tpu.matmul %0, %1, %cst {dimension_numbers = #tpu.dot_dimension_numbers<[1], [0], [0], [1], [0, 0, 1, 1], [], []>} : vector<8x4xbf16>, vector<4x128xbf16>, vector<8x128xf32> -> vector<8x128xf32>
    %c0_3 = arith.constant 0 : index
    %c0_4 = arith.constant 0 : index
    %3 = vector.load %arg3[%c0_3, %c0_4] : memref<1x128xf32, #tpu.memory_space<vmem>>, vector<1x128xf32>
    %4 = vector.broadcast %3 : vector<1x128xf32> to vector<8x128xf32>
    %5 = arith.addf %2, %4 : vector<8x128xf32>
    %cst_5 = arith.constant 0.000000e+00 : f32
    %6 = vector.broadcast %cst_5 : f32 to vector<8x128xf32>
    %7 = arith.maximumf %5, %6 : vector<8x128xf32>
    %8 = arith.truncf %7 : vector<8x128xf32> to vector<8x128xbf16>
    %c0_6 = arith.constant 0 : index
    %c0_7 = arith.constant 0 : index
    %9 = vector.load %arg4[%c0_6, %c0_7] : memref<128x128xbf16, #tpu.memory_space<vmem>>, vector<128x128xbf16>
    %cst_8 = arith.constant dense<0.000000e+00> : vector<8x128xf32>
    %10 = tpu.matmul %8, %9, %cst_8 {dimension_numbers = #tpu.dot_dimension_numbers<[1], [0], [0], [1], [0, 0, 1, 1], [], []>} : vector<8x128xbf16>, vector<128x128xbf16>, vector<8x128xf32> -> vector<8x128xf32>
    %c0_9 = arith.constant 0 : index
    %c0_10 = arith.constant 0 : index
    %11 = vector.load %arg5[%c0_9, %c0_10] : memref<1x128xf32, #tpu.memory_space<vmem>>, vector<1x128xf32>
    %12 = vector.broadcast %11 : vector<1x128xf32> to vector<8x128xf32>
    %13 = arith.addf %10, %12 : vector<8x128xf32>
    %cst_11 = arith.constant 0.000000e+00 : f32
    %14 = vector.broadcast %cst_11 : f32 to vector<8x128xf32>
    %15 = arith.maximumf %13, %14 : vector<8x128xf32>
    %16 = arith.truncf %15 : vector<8x128xf32> to vector<8x128xbf16>
    %c0_12 = arith.constant 0 : index
    %c0_13 = arith.constant 0 : index
    %17 = vector.load %arg6[%c0_12, %c0_13] : memref<128x128xbf16, #tpu.memory_space<vmem>>, vector<128x128xbf16>
    %cst_14 = arith.constant dense<0.000000e+00> : vector<8x128xf32>
    %18 = tpu.matmul %16, %17, %cst_14 {dimension_numbers = #tpu.dot_dimension_numbers<[1], [0], [0], [1], [0, 0, 1, 1], [], []>} : vector<8x128xbf16>, vector<128x128xbf16>, vector<8x128xf32> -> vector<8x128xf32>
    %c0_15 = arith.constant 0 : index
    %c0_16 = arith.constant 0 : index
    %19 = vector.load %arg7[%c0_15, %c0_16] : memref<1x128xf32, #tpu.memory_space<vmem>>, vector<1x128xf32>
    %20 = vector.broadcast %19 : vector<1x128xf32> to vector<8x128xf32>
    %21 = arith.addf %18, %20 : vector<8x128xf32>
    %c0_17 = arith.constant 0 : index
    %c0_18 = arith.constant 0 : index
    %22 = vector.load %arg8[%c0_17, %c0_18] : memref<8x128xf32, #tpu.memory_space<vmem>>, vector<8x128xf32>
    tpu.vector_store %arg8[%c0_17, %c0_18], %21 {strides = array<i32>} : memref<8x128xf32, #tpu.memory_space<vmem>>, vector<8x128xf32>,
    return
  }
  func.func @transform_0(%arg0: i32) -> (i32, i32) {
    %c0_i32 = arith.constant 0 : i32
    %c0_i32_0 = arith.constant 0 : i32
    return %arg0, %c0_i32 : i32, i32
  }
  func.func @transform_1(%arg0: i32) -> (i32, i32) {
    %c0_i32 = arith.constant 0 : i32
    %c0_i32_0 = arith.constant 0 : i32
    %c0_i32_1 = arith.constant 0 : i32
    return %c0_i32, %c0_i32_0 : i32, i32
  }
  func.func @transform_2(%arg0: i32) -> (i32, i32) {
    %c0_i32 = arith.constant 0 : i32
    %c0_i32_0 = arith.constant 0 : i32
    %c0_i32_1 = arith.constant 0 : i32
    return %c0_i32, %c0_i32_0 : i32, i32
  }
  func.func @transform_3(%arg0: i32) -> (i32, i32) {
    %c0_i32 = arith.constant 0 : i32
    %c0_i32_0 = arith.constant 0 : i32
    %c0_i32_1 = arith.constant 0 : i32
    return %c0_i32, %c0_i32_0 : i32, i32
  }
  func.func @transform_4(%arg0: i32) -> (i32, i32) {
    %c0_i32 = arith.constant 0 : i32
    %c0_i32_0 = arith.constant 0 : i32
    %c0_i32_1 = arith.constant 0 : i32
    return %c0_i32, %c0_i32_0 : i32, i32
  }
  func.func @transform_5(%arg0: i32) -> (i32, i32) {
    %c0_i32 = arith.constant 0 : i32
    %c0_i32_0 = arith.constant 0 : i32
    %c0_i32_1 = arith.constant 0 : i32
    return %c0_i32, %c0_i32_0 : i32, i32
  }
  func.func @transform_6(%arg0: i32) -> (i32, i32) {
    %c0_i32 = arith.constant 0 : i32
    %c0_i32_0 = arith.constant 0 : i32
    %c0_i32_1 = arith.constant 0 : i32
    return %c0_i32, %c0_i32_0 : i32, i32
  }
  func.func @transform_7(%arg0: i32) -> (i32, i32) {
    %c0_i32 = arith.constant 0 : i32
    %c0_i32_0 = arith.constant 0 : i32
    return %arg0, %c0_i32 : i32, i32
  }
}

</mosaic_0001>

<bundles_post_ra>
// kernel: tpu_custom_call.1
= control target key start
LH: loop header
LB: loop body
LE: loop exit
PB: predicated region body
PF: predicated region fallthrough
CT: control target
= control target key end

     0   :  { %12 = vsyncpa [#allocation3], 0  ;;  %s1208_s0 = inlined_call_operand.vmem [shape: bf16[16,4], index: 0, kind: input, shape index: {}]   ;;  %s1209_s1 = inlined_call_operand.vmem [shape: bf16[4,128], index: 1, kind: input, shape index: {}]   ;;  %s1210_s2 = inlined_call_operand.vmem [shape: f32[1,128], index: 2, kind: input, shape index: {}]   ;;  %s1211_s3 = inlined_call_operand.hbm [shape: bf16[128,128], index: 3, kind: input, shape index: {}]   ;;  %s1212_s4 = inlined_call_operand.vmem [shape: f32[1,128], index: 4, kind: input, shape index: {}]   ;;  %s1213_s5 = inlined_call_operand.hbm [shape: bf16[128,128], index: 5, kind: input, shape index: {}]   ;;  %s1214_s6 = inlined_call_operand.vmem [shape: f32[1,128], index: 6, kind: input, shape index: {}]   ;;  %s1215_s7 = inlined_call_operand.hbm [shape: f32[16,128], index: 7, kind: output, shape index: {}]  }
   0x1   :  { %13 = vsyncpa [#allocation6], 0 }
   0x2   :  { %14 = vsyncpa [#allocation4], 0 }
   0x3   :  { %16 = vsyncpa [#allocation4 + $0x1], 0  ;;  %s1033_s24 = smov 0   ;;  %s1035_s25 = smov 0  }
   0x4   :  { %s1037_s26 = smov 0   ;;  %s1039_s27 = smov 0  }
   0x5 LB: > { %s1054_s28 = sadd.s32 4294967295, %s984_s27   ;;  %s684_s29 = sadd.s32 4294967294, %s984_s27   ;;  %s984_s27 = sphi %s1039_s27, %s1229_s27   ;;  %s980_s26 = sphi %s1037_s26, %s1228_s26   ;;  %s976_s25 = sphi %s1035_s25, %s1227_s25   ;;  %s972_s24 = sphi %s1033_s24, %s1226_s24  }
   0x6   : > { %s1058_s30 = sadd.s32 1, %s984_s27   ;;  %s181_s8 = sadd.s32 1, %s980_s26 }
   0x7   : > { %s178_s9 = ssub.s32 %s984_s27, %s1058_s30  ;;  %p191_p0 = scmp.ne.s32.totalorder %s980_s26, %s976_s25 }
   0x8   : > { %p179_p1 = scmp.eq.s32.totalorder %s178_s9, 0  ;;  %p192_p2 = scmp.eq.s32.totalorder %s1054_s28, 1 }
   0x9   : > { %p197_p3 = scmp.ne.s32.totalorder %s976_s25, %s972_s24  ;;  %p198_p4 = scmp.eq.s32.totalorder %s684_s29, 1 }
   0xa   : > { %s1069_s10 = scalar_select %p179_p1, %s980_s26, %s181_s8  }
   0xb   : > { %p1071_p5 = por %p192_p2, %p191_p0  ;;  %p1075_p6 = por %p198_p4, %p197_p3 }
   0xc   : > { %p685_p7 = scmp.ge.s32.totalorder %s984_s27, 1  ;;  %p205_p8 = scmp.lt.s32.totalorder %s984_s27, 3 }
   0xd   : > { %s1218_s12 = scalar_select %p1075_p6, 1, 0 }
   0xe   : > { %p1216_p9 = scmp.eq.s32.totalorder %s1054_s28, 0  ;;  %p1082_p10 = pnand %p685_p7, %p205_p8 }
   0xf   : > { %s986_s14 = smov [#allocation2]   ;;  %s987_s17 = smov [#allocation5]  }
  0x10   : > { %s223_s15 = sshll.u32 %s986_s14, 4  ;;  %p794_p11 = pneg %p1082_p10  ;;  %s224_s15 = int_to_ptr.vmem [resolvable:$true] %s223_s15 }
  0x11   : > { %s239_s18 = sshll.u32 %s987_s17, 4  ;;  %s875_s19 = scalar_lea.vmem %s224_s15, 1024  ;;  %s240_s18 = int_to_ptr.vmem [resolvable:$true] %s239_s18 }
  0x12   : > { %p1090_p12 = pnand %p1216_p9, %p794_p11  ;;  %p876_p0 = scmp.ne.s32.totalorder %s224_s15, %s875_s19 }
  0x13   : > { %p883_p3 = scmp.lt.s32.totalorder %s224_s15, %s224_s15  ;;  %p884_p4 = scmp.lt.s32.totalorder %s875_s19, %s875_s19 }
  0x14   : > { %p866_p13 = pneg %p1090_p12 }
  0x15   : > { %p885_p7 = por %p884_p4, %p883_p3 }
  0x16   : > { %p878_p1 = pnand %p876_p0, %p866_p13 }
  0x18   : > { %p879_p2 = pneg %p878_p1 }
  0x1a   : > { %p886_p8 = pnand %p885_p7, %p879_p2 }
  0x1c   : > { %889 = shalt.err (!%p886_p8)
}
  0x1d   : > { %s988_s20 = smov 64   ;;  %s989_s21 = smov 4  }
  0x1e   : > { %797 = dma.hbm_to_vmem [thread:$0]  (!%p1090_p12), %s1211_s3, 1024, %s224_s15, [#allocation3], %s988_s20, %s988_s20, %s989_s21  }
  0x1f   : > { %s901_s29 = scalar_lea.vmem %s240_s18, 1024  ;;  %p909_p9 = scmp.lt.s32.totalorder %s240_s18, %s240_s18 }
  0x20   : > { %p902_p11 = scmp.ne.s32.totalorder %s240_s18, %s901_s29  ;;  %p910_p6 = scmp.lt.s32.totalorder %s901_s29, %s901_s29 }
  0x22   : > { %p904_p0 = pnand %p902_p11, %p866_p13  ;;  %p911_p3 = por %p910_p6, %p909_p9 }
  0x24   : > { %p905_p1 = pneg %p904_p0 }
  0x26   : > { %p912_p2 = pnand %p911_p3, %p905_p1 }
  0x28   : > { %915 = shalt.err (!%p912_p2)
}
  0x29   : > { %800 = dma.hbm_to_vmem [thread:$0]  (!%p1090_p12), %s1213_s5, 1024, %s240_s18, [#allocation6], %s988_s20, %s988_s20, %s989_s21  }
  0x2a   : > { %265 = sbr.rel (%p1082_p10) target bundleno = 665 (0x299), region = 48  ;;  %p1221_p4 = scmp.eq.s32.totalorder (!%p1082_p10), %s1054_s28, 0 }
  0x2f   : > { %959 = dma.done.wait (%p1221_p4), [#allocation3], 1024   ;;  %p1222_p13 = pmov %p1221_p4 }
  0x30   : > { %p1223_p7 = pmov %p1221_p4 }
  0x31   : > { %961 = vsyncadd (%p1222_p13), [#allocation3], 4294966272 }
  0x32   : > { %963 = dma.done.wait (%p1223_p7), [#allocation6], 1024   ;;  %p1224_p6 = pmov %p1221_p4 }
  0x33   : > { %p300_p9 = scmp.lt.s32.totalorder %s1054_s28, 1  ;;  %v990_v0 = vmov 0.0   ;;  %vm991_vm0 = vmmov 0   ;;  %vm318_vm1 = vcmask 1041408   ;;  %v306_v1 = vld [vmem:[%s1209_s1] sm:$0x3] }
  0x34   : > { %965 = vsyncadd (%p1224_p6), [#allocation6], 4294966272  ;;  %738 = vmatprep.subr.bf16.mxu0 %v990_v0  ;;  %740 = vmatprep.mubr.msk.bf16.mxu0 %vm991_vm0, %v990_v0  ;;  %vm314_vm2 = vcmask 31744   ;;  %v320_v2 = vsel %vm318_vm1, %v306_v1, 0  ;;  %v848_v3 = vld [vmem:[#allocation2 + $0x38] sm:$0xff]   ;;  %v849_v5 = vld [vmem:[#allocation2 + $0x30] sm:$0xff]  }
  0x35   : > { %s301_s13 = scalar_select %p300_p9, %s1054_s28, 1  ;;  %744 = vmatprep.subr.bf16.mxu1 %v990_v0  ;;  %760 = vmatprep.mubr.msk.bf16.mxu1 %vm991_vm0, %v990_v0  ;;  %v850_v6 = vld [vmem:[#allocation2 + $0x28] sm:$0xff]   ;;  %v851_v7 = vld [vmem:[#allocation2 + $0x20] sm:$0xff]   ;;  %v852_v8 = vld [vmem:[#allocation2 + $0x18] sm:$0xff]  }
  0x36   : > { %739 = vmatpush3.bf16.msra.mxu0 %v320_v2  ;;  %745 = vmatpush3.bf16.msra.mxu1 %v848_v3  ;;  %v853_v9 = vld [vmem:[#allocation2 + $0x10] sm:$0xff]   ;;  %v854_v10 = vld [vmem:[#allocation2 + $0x8] sm:$0xff]   ;;  %v855_v11 = vld [vmem:[#allocation2] sm:$0xff]   ;;  %s297_s29 = sand.u32 1, %s976_s25  }
  0x37   : > { %s693_s14 = sshll.u32 %s301_s13, 2  ;;  %764 = vmatprep.subr.bf16.mxu0 %v990_v0  ;;  %746 = vmatprep.subr.bf16.mxu1 %v990_v0  ;;  %v856_v12 = vld [vmem:[#allocation5 + $0x38] sm:$0xff]   ;;  %v857_v13 = vld [vmem:[#allocation5 + $0x30] sm:$0xff]   ;;  %v858_v14 = vld [vmem:[#allocation5 + $0x28] sm:$0xff]   ;;  %s692_s8 = sshll.u32 %s297_s29, 3 }
  0x38   : > { %s303_s17 = scalar_lea.vmem %s1208_s0, %s693_s14  ;;  %v859_v15 = vld [vmem:[#allocation5 + $0x20] sm:$0xff]   ;;  %v860_v16 = vld [vmem:[#allocation5 + $0x18] sm:$0xff]   ;;  %v861_v17 = vld [vmem:[#allocation5 + $0x10] sm:$0xff]   ;;  %s715_s14 = sshll.u32 %s1054_s28, 7 }
  0x39   : > { %v305_v4 = vld [vmem:[%s303_s17] sm:$0xf]  ;;  %v862_v26 = vld [vmem:[#allocation5 + $0x8] sm:$0xff]   ;;  %s299_s15 = scalar_lea.vmem [#allocation7], %s692_s8  ;;  %s1167_s19 = scalar_lea.hbm %s1215_s7, %s715_s14 }
  0x3a   : > { %741 = vmatmul.mubr.msk.bf16.vlgmr.msra.gmra.mxu0 %vm314_vm2, %v305_v4  ;;  %747 = vmatpush3.bf16.msra.mxu1 %v849_v5  ;;  %v694_v18 = vld [vmem:[%s1210_s2] ss:$0 sm:$0xff]  ;;  %s603_s16 = sshll.u32 %s299_s15, 4  ;;  %s590_s20 = scalar_lea.sflag [#allocation4], %s297_s29  ;;  %s1169_s16 = int_to_ptr.vmem [resolvable:$true] %s603_s16 }
  0x3b   : > { %780 = vmatprep.mubr.msk.bf16.mxu0 %vm991_vm0, %v990_v0  ;;  %748 = vmatprep.subr.bf16.mxu1 %v990_v0  ;;  %v863_v27 = vld [vmem:[#allocation5] sm:$0xff]   ;;  %s916_s21 = scalar_lea.vmem %s1169_s16, 128  ;;  %s992_s28 = smov [#allocation7]  }
  0x3c   : > { %765 = vmatpush3.bf16.msra.mxu0 %v856_v12  ;;  %v696_v28 = vld [vmem:[%s1212_s4] ss:$0 sm:$0xff]  ;;  %p917_p10 = scmp.ne.s32.totalorder %s1169_s16, %s916_s21  ;;  %s920_s22 = sshll.u32 %s992_s28, 4  ;;  %s921_s22 = int_to_ptr.vmem [resolvable:$false] %s920_s22 }
  0x3d   : > { %766 = vmatprep.subr.bf16.mxu0 %v990_v0  ;;  %v705_v36 = vld [vmem:[%s1214_s6] ss:$0 sm:$0xff]  ;;  %s922_s23 = scalar_lea.vmem %s921_s22, 256  ;;  %p923_p11 = scmp.lt.s32.totalorder %s1169_s16, %s921_s22 }
  0x3e   : > { %749 = vmatpush3.bf16.msra.mxu1 %v850_v6  ;;  %p918_p12 = pnand %p917_p10, %p1071_p5  ;;  %p924_p0 = scmp.lt.s32.totalorder %s922_s23, %s916_s21 }
  0x3f   : > { %750 = vmatprep.subr.bf16.mxu1 %v990_v0 }
  0x40   : > { %767 = vmatpush3.bf16.msra.mxu0 %v857_v13  ;;  %p919_p8 = pneg %p918_p12  ;;  %p925_p1 = por %p924_p0, %p923_p11 }
  0x41   : > { %768 = vmatprep.subr.bf16.mxu0 %v990_v0 }
  0x42   : > { %751 = vmatpush3.bf16.msra.mxu1 %v851_v7  ;;  %p926_p3 = pnand %p925_p1, %p919_p8 }
  0x43   : > { %752 = vmatprep.subr.bf16.mxu1 %v990_v0 }
  0x44   : > { %769 = vmatpush3.bf16.msra.mxu0 %v858_v14 }
  0x45   : > { %770 = vmatprep.subr.bf16.mxu0 %v990_v0 }
  0x46   : > { %753 = vmatpush3.bf16.msra.mxu1 %v852_v8 }
  0x47   : > { %754 = vmatprep.subr.bf16.mxu1 %v990_v0 }
  0x48   : > { %771 = vmatpush3.bf16.msra.mxu0 %v859_v15 }
  0x49   : > { %772 = vmatprep.subr.bf16.mxu0 %v990_v0 }
  0x4a   : > { %755 = vmatpush3.bf16.msra.mxu1 %v853_v9 }
  0x4b   : > { %756 = vmatprep.subr.bf16.mxu1 %v990_v0 }
  0x4c   : > { %773 = vmatpush3.bf16.msra.mxu0 %v860_v16 }
  0x4d   : > { %774 = vmatprep.subr.bf16.mxu0 %v990_v0 }
  0x4e   : > { %757 = vmatpush3.bf16.msra.mxu1 %v854_v10 }
  0x4f   : > { %758 = vmatprep.subr.bf16.mxu1 %v990_v0 }
  0x50   : > { %775 = vmatpush3.bf16.msra.mxu0 %v861_v17 }
  0x51   : > { %776 = vmatprep.subr.bf16.mxu0 %v990_v0 }
  0x52   : > { %759 = vmatpush3.bf16.msra.mxu1 %v855_v11 }
  0x54   : > { %777 = vmatpush3.bf16.msra.mxu0 %v862_v26 }
  0x55   : > { %778 = vmatprep.subr.bf16.mxu0 %v990_v0 }
  0x58   : > { %779 = vmatpush3.bf16.msra.mxu0 %v863_v27 }
  0xfa   : > { %v356_v19 = vpop.f32.mrf.mxu0 }
  0xfb   : > { %v357_v20 = vadd.f32 %v694_v18, %v356_v19 }
  0xfc   : > { %v742_v21 = vpop.f32.mrf.mxu0 }
  0xfd   : > { %v362_v22 = vmax.f32 %v357_v20, 0.0 }
  0xfe   : > { %v359_v23 = vpop.f32.mrf.mxu0 }
  0xff   : > { %v363_v24 = vpack.c.bf16 %v362_v22, %v362_v22 }
 0x100   : > { %v743_v25 = vpop.f32.mrf.mxu0 }
 0x101   : > { %761 = vmatmul.mubr.bf16.vlgmr.msra.gmra.mxu1 %v363_v24 }
 0x1c1   : > { %v469_v29 = vpop.f32.mrf.mxu1 }
 0x1c2   : > { %v470_v30 = vadd.f32 %v696_v28, %v469_v29 }
 0x1c3   : > { %v762_v31 = vpop.f32.mrf.mxu1 }
 0x1c4   : > { %v475_v32 = vmax.f32 %v470_v30, 0.0 }
 0x1c5   : > { %v472_v33 = vpop.f32.mrf.mxu1 }
 0x1c6   : > { %v476_v34 = vpack.c.bf16 %v475_v32, %v475_v32 }
 0x1c7   : > { %v763_v35 = vpop.f32.mrf.mxu1 }
 0x1c8   : > { %781 = vmatmul.mubr.bf16.vlgmr.msra.gmra.mxu0 %v476_v34 }
 0x288   : > { %v582_v37 = vpop.f32.mrf.mxu0 }
 0x289   : > { %v583_v38 = vadd.f32 %v705_v36, %v582_v37 }
 0x28a   : > { %v782_v39 = vpop.f32.mrf.mxu0 }
 0x28b   : > { %588 = vst [vmem:[%s299_s15] sm:$0xff] %v583_v38 }
 0x28c   : > { %v585_v40 = vpop.f32.mrf.mxu0 }
 0x28d   : > { %929 = shalt.err (!%p926_p3)
}
 0x28e   : > { %s930_s8 = scalar_lea.hbm %s1167_s19, 128  ;;  %s934_s13 = scalar_lea.hbm %s1215_s7, 256 }
 0x28f   : > { %p931_p2 = scmp.ne.s32.totalorder %s1167_s19, %s930_s8  ;;  %p935_p7 = scmp.lt.s32.totalorder %s1167_s19, %s1215_s7 }
 0x290   : > { %p936_p6 = scmp.lt.s32.totalorder %s934_s13, %s930_s8 }
 0x291   : > { %p932_p4 = pnand %p931_p2, %p1071_p5 }
 0x292   : > { %p937_p9 = por %p936_p6, %p935_p7 }
 0x293   : > { %p933_p13 = pneg %p932_p4 }
 0x295   : > { %p938_p10 = pnand %p937_p9, %p933_p13 }
 0x297   : > { %941 = shalt.err (!%p938_p10)
}
 0x298   : > { %792 = dma.vmem_to_hbm [thread:$0]  (%p1071_p5), %s1169_s16, 128, %s1167_s19, %s590_s20   ;;  %v783_v41 = vpop.f32.mrf.mxu0 }
 0x299 PF: > { %p809_p12 = scmp.ge.s32.totalorder %s984_s27, 2  ;;  %s615_s17 = sand.u32 1, %s972_s24  }
 0x29a   : > { %p1225_p8 = scmp.ne.s32.totalorder %s1218_s12, 0  ;;  %s616_s18 = scalar_lea.sflag [#allocation4], %s615_s17 }
 0x29c   : > { %p802_p11 = pnand %p809_p12, %p1225_p8 }
 0x29e   : > { %p803_p0 = pneg %p802_p11 }
 0x2a0   : > { %967 = dma.done.wait (%p803_p0), %s616_s18, 128  }
 0x2a1   : > { %969 = vsyncadd (%p803_p0), %s616_s18, 4294967168  ;;  %p19_p1 = scmp.ge.s32.totalorder %s1058_s30, 4   ;;  %s1226_s24 = smov %s976_s25 }
 0x2a2   : > { %s1227_s25 = smov %s980_s26  ;;  %s1228_s26 = smov %s1069_s10 }
 0x2a3   : > { %s1229_s27 = smov %s1058_s30  ;;  %21 = sbr.rel (!%p19_p1) target bundleno = 5 (0x5), region = 92 }
 0x2a8   :  { %621 = vsyncpa [#allocation3], 1 }
 0x2a9   :  { %623 = vsyncpa [#allocation3 + $0x1], 1 }
 0x2aa   :  { %624 = vsyncpa [#allocation6], 1 }
 0x2ab   :  { %625 = vsyncpa [#allocation4], 1 }
 0x2ac   :  { %627 = vsyncpa [#allocation4 + $0x1], 1 }

</bundles_post_ra>
